<compile_context>
chip_gen: v6e
topology: v6e:2x2x1
jax: 0.10.0
libtpu: 0.0.40
codegen_flags: <defaults>
</compile_context>

<pallas_src>
import functools

import jax
import jax.numpy as jnp
from jax.experimental import pallas as pl
from jax.experimental.pallas import tpu as pltpu


_LN_EPS = 1e-5
_LANE = 128          # lane width; row tiles are multiples of this
_MAX_TILE_ROWS = 16384


def _mlp_kernel(*refs, num_layers, use_layer_norm, final_activation, residual):
    """Fused MLP in transposed layout (features on sublanes, rows on lanes).

    refs: xT, [gamma, beta], wT_0, b_0, ..., wT_{L-1}, b_{L-1}, outT
      xT block : (inp_dim, tile_m)
      wT_i     : (out_i, in_i)   (possibly bf16)
      b_i      : (out_i, 1)      (f32)
      outT blk : (outp_dim, tile_m)
    """
    out_ref = refs[-1]
    idx = 0
    x_ref = refs[idx]
    idx += 1
    if use_layer_norm:
        gamma_ref = refs[idx]
        beta_ref = refs[idx + 1]
        idx += 2
    param_refs = refs[idx:-1]

    x = x_ref[...].astype(jnp.float32)          # (inp_dim, tile_m)
    h = x

    if use_layer_norm:
        # Single-pass statistics over the feature (sublane) axis.
        mean = jnp.mean(h, axis=0, keepdims=True)          # (1, tile_m)
        mean_sq = jnp.mean(h * h, axis=0, keepdims=True)   # (1, tile_m)
        var = mean_sq - mean * mean
        h = (h - mean) * jax.lax.rsqrt(var + _LN_EPS)
        h = h * gamma_ref[...] + beta_ref[...]              # (inp_dim,1) bcast over lanes

    for i in range(num_layers):
        w = param_refs[2 * i][...]          # (out_i, in_i)
        b = param_refs[2 * i + 1][...]      # (out_i, 1), f32
        # Narrow only the matmul operands (bf16 MXU path); accumulate f32.
        rhs = h.astype(w.dtype) if w.dtype != h.dtype else h
        h = jnp.dot(w, rhs, preferred_element_type=jnp.float32)   # (out_i, tile_m)
        h = h + b
        if i < num_layers - 1 or final_activation:
            h = jnp.maximum(h, 0.0)

    if residual:
        h = x + h

    out_ref[...] = h.astype(out_ref.dtype)


def _round_up(x, m):
    return ((x + m - 1) // m) * m


def _vmem_capacity_bytes():
    """Generation-aware physical VMEM size; conservative fallback (v7x per-TC)."""
    try:
        info = pltpu.get_tpu_info()
        cap = getattr(info, "vmem_capacity_bytes", None)
        if cap:
            return int(cap)
    except Exception:
        pass
    return 64 * 1024 * 1024


def mlp_forward(x, params, *, use_layer_norm, final_activation, residual,
                matmul_dtype=jnp.bfloat16):
    """Flattens leading dims, row-tiles on the lane axis, calls the fused kernel."""
    orig_shape = x.shape
    inp_dim = int(orig_shape[-1])
    x2 = x.reshape(-1, inp_dim)
    n_rows = x2.shape[0]

    weights = params["weights"]          # each (in_dim, out_dim)
    biases = params["biases"]            # each (out_dim,)
    num_layers = len(weights)
    outp_dim = int(weights[-1].shape[1])
    if residual:
        assert inp_dim == outp_dim, "residual requires inp_dim == outp_dim"

    # ---- parameter preparation (done once, outside the kernel) ------------
    param_bytes = 0
    w_t, b_col = [], []
    for w in weights:
        wt = w.T                                        # (out, in) for W^T @ h
        if matmul_dtype is not None and wt.dtype == jnp.float32:
            wt = wt.astype(matmul_dtype)                # bf16 MXU operands
        w_t.append(wt)
        param_bytes += wt.size * wt.dtype.itemsize
    for b in biases:
        bc = b.reshape(-1, 1).astype(jnp.float32)       # elementwise math stays f32
        b_col.append(bc)
        param_bytes += bc.size * 4
    if use_layer_norm:
        gamma = params["gamma"].reshape(inp_dim, 1).astype(jnp.float32)
        beta = params["beta"].reshape(inp_dim, 1).astype(jnp.float32)
        param_bytes += 2 * inp_dim * 4

    # ---- VMEM-budgeted row tiling -----------------------------------------
    layer_dims = [inp_dim] + [int(w.shape[1]) for w in weights]
    # per-row f32 working set: 2x double-buffered in + 2x double-buffered out
    # + resident x copy + live intermediates (generous estimate).
    per_row_bytes = 4 * (3 * inp_dim + 2 * outp_dim + 2 * max(layer_dims))
    vmem_cap = _vmem_capacity_bytes()
    vmem_budget = int(0.75 * vmem_cap)                   # headroom below physical
    slack = 4 * 1024 * 1024
    avail = max(vmem_budget - param_bytes - slack, per_row_bytes * _LANE)
    max_tile = max(_LANE, min(_MAX_TILE_ROWS,
                              (avail // per_row_bytes) // _LANE * _LANE))

    num_tiles = max(pl.cdiv(n_rows, max_tile), 1)
    if n_rows >= 2 * _LANE:
        # Guarantee >= 2 grid steps so v7x can use both TensorCores.
        num_tiles = max(num_tiles, 2)
    tile_m = _round_up(pl.cdiv(n_rows, num_tiles), _LANE)   # minimal-padding tile
    num_tiles = pl.cdiv(n_rows, tile_m)
    n_padded = num_tiles * tile_m

    if n_padded != n_rows:
        # Zero rows are LayerNorm-safe thanks to the 1e-5 eps; sliced off below.
        x2 = jnp.pad(x2, ((0, n_padded - n_rows), (0, 0)))
    xT = x2.T                                             # (inp_dim, n_padded)

    # ---- inputs + specs ----------------------------------------------------
    inputs = [xT]
    in_specs = [pl.BlockSpec((inp_dim, tile_m), lambda i: (0, i))]
    if use_layer_norm:
        inputs += [gamma, beta]
        in_specs += [pl.BlockSpec((inp_dim, 1), lambda i: (0, 0)),
                     pl.BlockSpec((inp_dim, 1), lambda i: (0, 0))]
    for wt, bc in zip(w_t, b_col):
        inputs += [wt, bc]
        in_specs += [pl.BlockSpec(wt.shape, lambda i: (0, 0)),
                     pl.BlockSpec(bc.shape, lambda i: (0, 0))]
    out_specs = pl.BlockSpec((outp_dim, tile_m), lambda i: (0, i))

    # ---- vmem limit from the actual working set ----------------------------
    vmem_needed = param_bytes + tile_m * per_row_bytes + slack
    vmem_limit = int(min(max(2 * vmem_needed, 32 * 1024 * 1024), vmem_budget))
    vmem_limit = max(vmem_limit, vmem_needed)

    kernel = functools.partial(
        _mlp_kernel,
        num_layers=num_layers,
        use_layer_norm=use_layer_norm,
        final_activation=final_activation,
        residual=residual,
    )

    flops = 2 * n_padded * sum(int(w.shape[0]) * int(w.shape[1]) for w in weights)
    bytes_accessed = (n_padded * (inp_dim + outp_dim) * x.dtype.itemsize
                      + param_bytes)
    transcendentals = n_padded if use_layer_norm else 0

    outT = pl.pallas_call(
        kernel,
        out_shape=jax.ShapeDtypeStruct((outp_dim, n_padded), x.dtype),
        grid=(num_tiles,),
        in_specs=in_specs,
        out_specs=out_specs,
        compiler_params=pltpu.CompilerParams(
            dimension_semantics=("parallel",),
            vmem_limit_bytes=vmem_limit,
        ),
        cost_estimate=pl.CostEstimate(
            flops=int(flops),
            transcendentals=int(transcendentals),
            bytes_accessed=int(bytes_accessed),
        ),
    )(*inputs)

    out = outT.T[:n_rows]                                  # layout plumbing in XLA
    return out.reshape(orig_shape[:-1] + (outp_dim,))


def init_mlp_params(key, inp_dim, outp_dim, hidden_dims, dtype=jnp.float32):
    """PyTorch nn.Linear default init (U(-1/sqrt(fan_in), 1/sqrt(fan_in)));
    nn.LayerNorm gamma=1, beta=0."""
    dims = [inp_dim] + list(hidden_dims) + [outp_dim]
    weights, biases = [], []
    for i in range(len(dims) - 1):
        fan_in, fan_out = dims[i], dims[i + 1]
        key, kw, kb = jax.random.split(key, 3)
        bound = 1.0 / jnp.sqrt(jnp.float32(fan_in))
        # stored as (in_dim, out_dim) == transpose of PyTorch's (out, in)
        w = jax.random.uniform(kw, (fan_in, fan_out), jnp.float32, -bound, bound)
        b = jax.random.uniform(kb, (fan_out,), jnp.float32, -bound, bound)
        weights.append(w.astype(dtype))
        biases.append(b.astype(dtype))
    return {
        "gamma": jnp.ones((inp_dim,), jnp.float32),
        "beta": jnp.zeros((inp_dim,), jnp.float32),
        "weights": weights,
        "biases": biases,
    }


def mlp_reference(x, params, *, use_layer_norm, final_activation, residual,
                  matmul_dtype=jnp.bfloat16):
    """Plain-JAX reference (standard row-major orientation) mirroring the
    kernel's numerics: f32 elementwise, bf16 matmul operands, f32 accumulation."""
    h = x.astype(jnp.float32)
    x0 = h
    if use_layer_norm:
        mean = jnp.mean(h, axis=-1, keepdims=True)
        mean_sq = jnp.mean(h * h, axis=-1, keepdims=True)
        var = mean_sq - mean * mean
        h = (h - mean) * jax.lax.rsqrt(var + _LN_EPS)
        h = (h * params["gamma"].astype(jnp.float32)
             + params["beta"].astype(jnp.float32))
    n = len(params["weights"])
    for i, (w, b) in enumerate(zip(params["weights"], params["biases"])):
        if matmul_dtype is not None and w.dtype == jnp.float32:
            w = w.astype(matmul_dtype)
        lhs = h.astype(w.dtype) if w.dtype != h.dtype else h
        h = jnp.dot(lhs, w, preferred_element_type=jnp.float32)
        h = h + b.astype(jnp.float32)
        if i < n - 1 or final_activation:
            h = jnp.maximum(h, 0.0)
    if residual:
        h = x0 + h
    return h.astype(x.dtype)


if __name__ == "__main__":
    # MLP(inp_dim=32, outp_dim=32, hidden_dims=(64, 64),
    #     initial_layer_norm=True, final_activation=False, residual=True)
    inp_dim = 32
    outp_dim = 32
    hidden_dims = (64, 64)
    use_layer_norm = True
    final_activation = False
    residual = True

    key = jax.random.PRNGKey(0)
    key, kx1, kx2 = jax.random.split(key, 3)
    params = init_mlp_params(key, inp_dim, outp_dim, hidden_dims)

    # Case 1: small (batch, seq, feat) input — single grid step.
    x1 = jax.random.normal(kx1, (2, 8, inp_dim), jnp.float32)
    out1 = jax.block_until_ready(
        mlp_forward(x1, params, use_layer_norm=use_layer_norm,
                    final_activation=final_activation, residual=residual))
    ref1 = mlp_reference(x1, params, use_layer_norm=use_layer_norm,
                         final_activation=final_activation, residual=residual)
    assert out1.shape == (2, 8, outp_dim), out1.shape
    assert jnp.allclose(out1, ref1, atol=2e-3, rtol=2e-3), \
        "mismatch vs reference (case 1)"

    # Case 2: larger row count — exercises multi-step grid + row padding
    # (and the >=2-grid-step rule for v7x megacore sharding).
    x2 = jax.random.normal(kx2, (4, 300, inp_dim), jnp.float32)
    out2 = jax.block_until_ready(
        mlp_forward(x2, params, use_layer_norm=use_layer_norm,
                    final_activation=final_activation, residual=residual))
    ref2 = mlp_reference(x2, params, use_layer_norm=use_layer_norm,
                         final_activation=final_activation, residual=residual)
    assert out2.shape == (4, 300, outp_dim), out2.shape
    assert jnp.allclose(out2, ref2, atol=2e-3, rtol=2e-3), \
        "mismatch vs reference (case 2)"

    print("KERNEL_OK")
</pallas_src>

<mosaic_0001>
module attributes {stable_mosaic.version = 11 : i64} {
  func.func @_mlp_kernel(%arg0: i32, %arg1: memref<32x128xf32, #tpu.memory_space<vmem>>, %arg2: memref<32x1xf32, #tpu.memory_space<vmem>>, %arg3: memref<32x1xf32, #tpu.memory_space<vmem>>, %arg4: memref<64x32xbf16, #tpu.memory_space<vmem>>, %arg5: memref<64x1xf32, #tpu.memory_space<vmem>>, %arg6: memref<64x64xbf16, #tpu.memory_space<vmem>>, %arg7: memref<64x1xf32, #tpu.memory_space<vmem>>, %arg8: memref<32x64xbf16, #tpu.memory_space<vmem>>, %arg9: memref<32x1xf32, #tpu.memory_space<vmem>>, %arg10: memref<32x128xf32, #tpu.memory_space<vmem>>) attributes {dimension_semantics = [#tpu.dimension_semantics<parallel>], iteration_bounds = array<i64: 1>, scalar_prefetch = 0 : i64, scratch_operands = 0 : i64, tpu.core_type = #tpu.core_type<tc>, window_params = [{transform_indices = @transform_0, window_bounds = array<i64: 32, 128>}, {pipeline_mode = #tpu.pipeline_mode<synchronous>, transform_indices = @transform_1, window_bounds = array<i64: 32, 1>}, {pipeline_mode = #tpu.pipeline_mode<synchronous>, transform_indices = @transform_2, window_bounds = array<i64: 32, 1>}, {pipeline_mode = #tpu.pipeline_mode<synchronous>, transform_indices = @transform_3, window_bounds = array<i64: 64, 32>}, {pipeline_mode = #tpu.pipeline_mode<synchronous>, transform_indices = @transform_4, window_bounds = array<i64: 64, 1>}, {pipeline_mode = #tpu.pipeline_mode<synchronous>, transform_indices = @transform_5, window_bounds = array<i64: 64, 64>}, {pipeline_mode = #tpu.pipeline_mode<synchronous>, transform_indices = @transform_6, window_bounds = array<i64: 64, 1>}, {pipeline_mode = #tpu.pipeline_mode<synchronous>, transform_indices = @transform_7, window_bounds = array<i64: 32, 64>}, {pipeline_mode = #tpu.pipeline_mode<synchronous>, transform_indices = @transform_8, window_bounds = array<i64: 32, 1>}, {transform_indices = @transform_9, window_bounds = array<i64: 32, 128>}]} {
    %c0 = arith.constant 0 : index
    %c0_0 = arith.constant 0 : index
    %0 = vector.load %arg1[%c0, %c0_0] : memref<32x128xf32, #tpu.memory_space<vmem>>, vector<32x128xf32>
    %cst = arith.constant dense<0.000000e+00> : vector<128xf32>
    %1 = vector.multi_reduction <add>, %0, %cst [0] : vector<32x128xf32> to vector<128xf32>
    %2 = vector.shape_cast %1 : vector<128xf32> to vector<1x128xf32>
    %cst_1 = arith.constant 3.200000e+01 : f32
    %3 = vector.broadcast %cst_1 : f32 to vector<1x128xf32>
    %4 = arith.divf %2, %3 : vector<1x128xf32>
    %5 = arith.mulf %0, %0 : vector<32x128xf32>
    %cst_2 = arith.constant dense<0.000000e+00> : vector<128xf32>
    %6 = vector.multi_reduction <add>, %5, %cst_2 [0] : vector<32x128xf32> to vector<128xf32>
    %7 = vector.shape_cast %6 : vector<128xf32> to vector<1x128xf32>
    %cst_3 = arith.constant 3.200000e+01 : f32
    %8 = vector.broadcast %cst_3 : f32 to vector<1x128xf32>
    %9 = arith.divf %7, %8 : vector<1x128xf32>
    %10 = arith.mulf %4, %4 : vector<1x128xf32>
    %11 = arith.subf %9, %10 : vector<1x128xf32>
    %12 = vector.broadcast %4 : vector<1x128xf32> to vector<32x128xf32>
    %13 = arith.subf %0, %12 : vector<32x128xf32>
    %cst_4 = arith.constant 9.99999974E-6 : f32
    %14 = vector.broadcast %cst_4 : f32 to vector<1x128xf32>
    %15 = arith.addf %11, %14 : vector<1x128xf32>
    %16 = math.rsqrt %15 : vector<1x128xf32>
    %17 = vector.broadcast %16 : vector<1x128xf32> to vector<32x128xf32>
    %18 = arith.mulf %13, %17 : vector<32x128xf32>
    %c0_5 = arith.constant 0 : index
    %c0_6 = arith.constant 0 : index
    %19 = vector.load %arg2[%c0_5, %c0_6] : memref<32x1xf32, #tpu.memory_space<vmem>>, vector<32x1xf32>
    %20 = vector.broadcast %19 : vector<32x1xf32> to vector<32x128xf32>
    %21 = arith.mulf %18, %20 : vector<32x128xf32>
    %c0_7 = arith.constant 0 : index
    %c0_8 = arith.constant 0 : index
    %22 = vector.load %arg3[%c0_7, %c0_8] : memref<32x1xf32, #tpu.memory_space<vmem>>, vector<32x1xf32>
    %23 = vector.broadcast %22 : vector<32x1xf32> to vector<32x128xf32>
    %24 = arith.addf %21, %23 : vector<32x128xf32>
    %c0_9 = arith.constant 0 : index
    %c0_10 = arith.constant 0 : index
    %25 = vector.load %arg4[%c0_9, %c0_10] : memref<64x32xbf16, #tpu.memory_space<vmem>>, vector<64x32xbf16>
    %c0_11 = arith.constant 0 : index
    %c0_12 = arith.constant 0 : index
    %26 = vector.load %arg5[%c0_11, %c0_12] : memref<64x1xf32, #tpu.memory_space<vmem>>, vector<64x1xf32>
    %27 = arith.truncf %24 : vector<32x128xf32> to vector<32x128xbf16>
    %cst_13 = arith.constant dense<0.000000e+00> : vector<64x128xf32>
    %28 = tpu.matmul %25, %27, %cst_13 {dimension_numbers = #tpu.dot_dimension_numbers<[1], [0], [0], [1], [0, 0, 1, 1], [], []>} : vector<64x32xbf16>, vector<32x128xbf16>, vector<64x128xf32> -> vector<64x128xf32>
    %29 = vector.broadcast %26 : vector<64x1xf32> to vector<64x128xf32>
    %30 = arith.addf %28, %29 : vector<64x128xf32>
    %cst_14 = arith.constant 0.000000e+00 : f32
    %31 = vector.broadcast %cst_14 : f32 to vector<64x128xf32>
    %32 = arith.maximumf %30, %31 : vector<64x128xf32>
    %c0_15 = arith.constant 0 : index
    %c0_16 = arith.constant 0 : index
    %33 = vector.load %arg6[%c0_15, %c0_16] : memref<64x64xbf16, #tpu.memory_space<vmem>>, vector<64x64xbf16>
    %c0_17 = arith.constant 0 : index
    %c0_18 = arith.constant 0 : index
    %34 = vector.load %arg7[%c0_17, %c0_18] : memref<64x1xf32, #tpu.memory_space<vmem>>, vector<64x1xf32>
    %35 = arith.truncf %32 : vector<64x128xf32> to vector<64x128xbf16>
    %cst_19 = arith.constant dense<0.000000e+00> : vector<64x128xf32>
    %36 = tpu.matmul %33, %35, %cst_19 {dimension_numbers = #tpu.dot_dimension_numbers<[1], [0], [0], [1], [0, 0, 1, 1], [], []>} : vector<64x64xbf16>, vector<64x128xbf16>, vector<64x128xf32> -> vector<64x128xf32>
    %37 = vector.broadcast %34 : vector<64x1xf32> to vector<64x128xf32>
    %38 = arith.addf %36, %37 : vector<64x128xf32>
    %cst_20 = arith.constant 0.000000e+00 : f32
    %39 = vector.broadcast %cst_20 : f32 to vector<64x128xf32>
    %40 = arith.maximumf %38, %39 : vector<64x128xf32>
    %c0_21 = arith.constant 0 : index
    %c0_22 = arith.constant 0 : index
    %41 = vector.load %arg8[%c0_21, %c0_22] : memref<32x64xbf16, #tpu.memory_space<vmem>>, vector<32x64xbf16>
    %c0_23 = arith.constant 0 : index
    %c0_24 = arith.constant 0 : index
    %42 = vector.load %arg9[%c0_23, %c0_24] : memref<32x1xf32, #tpu.memory_space<vmem>>, vector<32x1xf32>
    %43 = arith.truncf %40 : vector<64x128xf32> to vector<64x128xbf16>
    %cst_25 = arith.constant dense<0.000000e+00> : vector<32x128xf32>
    %44 = tpu.matmul %41, %43, %cst_25 {dimension_numbers = #tpu.dot_dimension_numbers<[1], [0], [0], [1], [0, 0, 1, 1], [], []>} : vector<32x64xbf16>, vector<64x128xbf16>, vector<32x128xf32> -> vector<32x128xf32>
    %45 = vector.broadcast %42 : vector<32x1xf32> to vector<32x128xf32>
    %46 = arith.addf %44, %45 : vector<32x128xf32>
    %47 = arith.addf %0, %46 : vector<32x128xf32>
    %c0_26 = arith.constant 0 : index
    %c0_27 = arith.constant 0 : index
    %48 = vector.load %arg10[%c0_26, %c0_27] : memref<32x128xf32, #tpu.memory_space<vmem>>, vector<32x128xf32>
    tpu.vector_store %arg10[%c0_26, %c0_27], %47 {strides = array<i32>} : memref<32x128xf32, #tpu.memory_space<vmem>>, vector<32x128xf32>,
    return
  }
  func.func @transform_0(%arg0: i32) -> (i32, i32) {
    %c0_i32 = arith.constant 0 : i32
    %c0_i32_0 = arith.constant 0 : i32
    return %c0_i32, %arg0 : i32, i32
  }
  func.func @transform_1(%arg0: i32) -> (i32, i32) {
    %c0_i32 = arith.constant 0 : i32
    %c0_i32_0 = arith.constant 0 : i32
    %c0_i32_1 = arith.constant 0 : i32
    return %c0_i32, %c0_i32_0 : i32, i32
  }
  func.func @transform_2(%arg0: i32) -> (i32, i32) {
    %c0_i32 = arith.constant 0 : i32
    %c0_i32_0 = arith.constant 0 : i32
    %c0_i32_1 = arith.constant 0 : i32
    return %c0_i32, %c0_i32_0 : i32, i32
  }
  func.func @transform_3(%arg0: i32) -> (i32, i32) {
    %c0_i32 = arith.constant 0 : i32
    %c0_i32_0 = arith.constant 0 : i32
    %c0_i32_1 = arith.constant 0 : i32
    return %c0_i32, %c0_i32_0 : i32, i32
  }
  func.func @transform_4(%arg0: i32) -> (i32, i32) {
    %c0_i32 = arith.constant 0 : i32
    %c0_i32_0 = arith.constant 0 : i32
    %c0_i32_1 = arith.constant 0 : i32
    return %c0_i32, %c0_i32_0 : i32, i32
  }
  func.func @transform_5(%arg0: i32) -> (i32, i32) {
    %c0_i32 = arith.constant 0 : i32
    %c0_i32_0 = arith.constant 0 : i32
    %c0_i32_1 = arith.constant 0 : i32
    return %c0_i32, %c0_i32_0 : i32, i32
  }
  func.func @transform_6(%arg0: i32) -> (i32, i32) {
    %c0_i32 = arith.constant 0 : i32
    %c0_i32_0 = arith.constant 0 : i32
    %c0_i32_1 = arith.constant 0 : i32
    return %c0_i32, %c0_i32_0 : i32, i32
  }
  func.func @transform_7(%arg0: i32) -> (i32, i32) {
    %c0_i32 = arith.constant 0 : i32
    %c0_i32_0 = arith.constant 0 : i32
    %c0_i32_1 = arith.constant 0 : i32
    return %c0_i32, %c0_i32_0 : i32, i32
  }
  func.func @transform_8(%arg0: i32) -> (i32, i32) {
    %c0_i32 = arith.constant 0 : i32
    %c0_i32_0 = arith.constant 0 : i32
    %c0_i32_1 = arith.constant 0 : i32
    return %c0_i32, %c0_i32_0 : i32, i32
  }
  func.func @transform_9(%arg0: i32) -> (i32, i32) {
    %c0_i32 = arith.constant 0 : i32
    %c0_i32_0 = arith.constant 0 : i32
    return %c0_i32, %arg0 : i32, i32
  }
}

</mosaic_0001>

<bundles_post_ra>
// kernel: tpu_custom_call.1
= control target key start
LH: loop header
LB: loop body
LE: loop exit
PB: predicated region body
PF: predicated region fallthrough
CT: control target
= control target key end

     0   :  { %v702_v2 = vmov 0   ;;  %vm209_vm0 = vcmask 261120   ;;  %s923_s0 = inlined_call_operand.vmem [shape: f32[32,128], index: 0, kind: input, shape index: {}]   ;;  %s924_s1 = inlined_call_operand.vmem [shape: f32[32,1], index: 1, kind: input, shape index: {}]   ;;  %s925_s2 = inlined_call_operand.vmem [shape: f32[32,1], index: 2, kind: input, shape index: {}]   ;;  %s926_s3 = inlined_call_operand.vmem [shape: bf16[64,32], index: 3, kind: input, shape index: {}]   ;;  %s927_s4 = inlined_call_operand.vmem [shape: f32[64,1], index: 4, kind: input, shape index: {}]   ;;  %s928_s5 = inlined_call_operand.vmem [shape: bf16[64,64], index: 5, kind: input, shape index: {}]   ;;  %s929_s6 = inlined_call_operand.vmem [shape: f32[64,1], index: 6, kind: input, shape index: {}]   ;;  %s930_s7 = inlined_call_operand.vmem [shape: bf16[32,64], index: 7, kind: input, shape index: {}]   ;;  %s931_s8 = inlined_call_operand.vmem [shape: f32[32,1], index: 8, kind: input, shape index: {}]   ;;  %s932_s9 = inlined_call_operand.hbm [shape: f32[32,128], index: 9, kind: output, shape index: {}]  }
   0x1   :  { %v105_v0 = vld [vmem:[%s925_s2 + $0x10] sm:$0xff]  ;;  %667 = vset.pattern.permute.xlu1 %v702_v2  ;;  %666 = vset.pattern.permute.xlu0 %v702_v2  ;;  %v106_v3 = vld [vmem:[%s925_s2 + $0x18] sm:$0xff]  ;;  %v76_v5 = vld [vmem:[%s924_s1 + $0x8] sm:$0xff] }
   0x2   :  { %v77_v1 = vld [vmem:[%s924_s1 + $0x10] sm:$0xff]  ;;  %119 = vperm.xlu1 %667, %v105_v0   ;;  %v78_v4 = vld [vmem:[%s924_s1 + $0x18] sm:$0xff]  ;;  %v75_v6 = vld [vmem:[%s924_s1] sm:$0xff] }
   0x3   :  { %91 = vperm.xlu0 %666, %v77_v1   ;;  %v104_v7 = vld [vmem:[%s925_s2 + $0x8] sm:$0xff]  ;;  %v103_v8 = vld [vmem:[%s925_s2] sm:$0xff]  ;;  %v146_v9 = vld [vmem:[%s927_s4 + $0x38] sm:$0xff] }
   0x4   :  { %v145_v10 = vld [vmem:[%s927_s4 + $0x30] sm:$0xff]  ;;  %v668_v11 = vld [vmem:[%s926_s3] sm:$0xff]  }
   0x5   :  { %626 = vmatprep.mubr.msk.bf16.mxu0 %vm209_vm0, %v668_v11 }
   0x6   :  { %124 = vperm.xlu1 %667, %v106_v3  }
   0x7   :  { %96 = vperm.xlu0 %666, %v78_v4  }
   0xa   :  { %86 = vperm.xlu1 %667, %v76_v5  }
   0xb   :  { %81 = vperm.xlu0 %666, %v75_v6  }
   0xe   :  { %114 = vperm.xlu1 %667, %v104_v7  }
   0xf   :  { %109 = vperm.xlu0 %666, %v103_v8  }
  0x12   :  { %186 = vperm.xlu1 %667, %v146_v9  }
  0x13   :  { %181 = vperm.xlu0 %666, %v145_v10  }
  0x14   :  { %14 = vsyncpa [#allocation3], 0  ;;  %v144_v12 = vld [vmem:[%s927_s4 + $0x28] sm:$0xff]  ;;  %v143_v13 = vld [vmem:[%s927_s4 + $0x20] sm:$0xff]  ;;  %vm375_vm1 = vcmask 523264   ;;  %s703_s17 = smov [#allocation2]  }
  0x15   :  { %v142_v14 = vld [vmem:[%s927_s4 + $0x18] sm:$0xff]  ;;  %v141_v15 = vld [vmem:[%s927_s4 + $0x10] sm:$0xff]  ;;  %v140_v16 = vld [vmem:[%s927_s4 + $0x8] sm:$0xff] }
  0x16   :  { %176 = vperm.xlu1 %667, %v144_v12   ;;  %v139_v17 = vld [vmem:[%s927_s4] sm:$0xff]  ;;  %v310_v18 = vld [vmem:[%s929_s6 + $0x38] sm:$0xff]  ;;  %v309_v19 = vld [vmem:[%s929_s6 + $0x30] sm:$0xff] }
  0x17   :  { %171 = vperm.xlu0 %666, %v143_v13   ;;  %v308_v20 = vld [vmem:[%s929_s6 + $0x28] sm:$0xff]  ;;  %v307_v21 = vld [vmem:[%s929_s6 + $0x20] sm:$0xff]  ;;  %v306_v22 = vld [vmem:[%s929_s6 + $0x18] sm:$0xff] }
  0x18   :  { %v305_v23 = vld [vmem:[%s929_s6 + $0x10] sm:$0xff]  ;;  %v304_v24 = vld [vmem:[%s929_s6 + $0x8] sm:$0xff]  ;;  %v303_v25 = vld [vmem:[%s929_s6] sm:$0xff] }
  0x19   :  { %v466_v26 = vld [vmem:[%s931_s8 + $0x8] sm:$0xff]  ;;  %v465_v27 = vld [vmem:[%s931_s8] sm:$0xff]  ;;  %v468_v28 = vld [vmem:[%s931_s8 + $0x18] sm:$0xff] }
  0x1a   :  { %166 = vperm.xlu1 %667, %v142_v14   ;;  %v467_v29 = vld [vmem:[%s931_s8 + $0x10] sm:$0xff]  ;;  %v847_v30 = vld [vmem:[%s923_s0] sm:$0xff]  ;;  %v852_v31 = vld [vmem:[%s923_s0 + $0x8] sm:$0xff] }
  0x1b   :  { %161 = vperm.xlu0 %666, %v141_v15   ;;  %v38_v32 = vadd.f32 %v852_v31, %v847_v30  ;;  %v49_v33 = vmul.f32 %v847_v30, %v847_v30  ;;  %v50_v34 = vmul.f32 %v852_v31, %v852_v31  ;;  %v863_v35 = vld [vmem:[%s923_s0 + $0x10] sm:$0xff]  ;;  %v871_v39 = vld [vmem:[%s923_s0 + $0x18] sm:$0xff] }
  0x1c   :  { %v51_v37 = vmul.f32 %v863_v35, %v863_v35  ;;  %v52_v41 = vmul.f32 %v871_v39, %v871_v39 }
  0x1d   :  { %v39_v36 = vadd.f32 %v38_v32, %v863_v35  ;;  %v53_v38 = vadd.f32 %v50_v34, %v49_v33 }
  0x1e   :  { %156 = vperm.xlu1 %667, %v140_v16  }
  0x1f   :  { %151 = vperm.xlu0 %666, %v139_v17   ;;  %v40_v40 = vadd.f32 %v39_v36, %v871_v39  ;;  %v54_v42 = vadd.f32 %v53_v38, %v51_v37 }
  0x21   :  { %v41_v43 = vrot.slane %v40_v40, 4  ;;  %v55_v44 = vadd.f32 %v54_v42, %v52_v41 }
  0x22   :  { %352 = vperm.xlu1 %667, %v310_v18  }
  0x23   :  { %347 = vperm.xlu0 %666, %v309_v19   ;;  %v42_v45 = vadd.f32 %v41_v43, %v40_v40  ;;  %v56_v46 = vrot.slane %v55_v44, 4 }
  0x25   :  { %v43_v47 = vrot.slane %v42_v45, 2  ;;  %v57_v48 = vadd.f32 %v56_v46, %v55_v44 }
  0x26   :  { %342 = vperm.xlu1 %667, %v308_v20  }
  0x27   :  { %337 = vperm.xlu0 %666, %v307_v21   ;;  %v44_v49 = vadd.f32 %v43_v47, %v42_v45  ;;  %v58_v50 = vrot.slane %v57_v48, 2 }
  0x29   :  { %v45_v51 = vrot.slane %v44_v49, 1  ;;  %v59_v52 = vadd.f32 %v58_v50, %v57_v48 }
  0x2a   :  { %332 = vperm.xlu1 %667, %v306_v22  }
  0x2b   :  { %327 = vperm.xlu0 %666, %v305_v23   ;;  %v46_v53 = vadd.f32 %v45_v51, %v44_v49  ;;  %v60_v54 = vrot.slane %v59_v52, 1 }
  0x2d   :  { %v48_v55 = vmul.f32 0.03125, %v46_v53  ;;  %v61_v56 = vadd.f32 %v60_v54, %v59_v52 }
  0x2e   :  { %322 = vperm.xlu1 %667, %v304_v24   ;;  %v669_v24 = vld [vmem:[%s926_s3 + $0x8] sm:$0xff]  }
  0x2f   :  { %317 = vperm.xlu0 %666, %v303_v25   ;;  %v62_v57 = vmul.f32 0.03125, %v61_v56  ;;  %v63_v58 = vmul.f32 %v48_v55, %v48_v55  ;;  %v67_v61 = vsub.f32 %v863_v35, %v48_v55  ;;  %v68_v63 = vsub.f32 %v871_v39, %v48_v55  ;;  %v670_v25 = vld [vmem:[%s926_s3 + $0x10] sm:$0xff]  }
  0x30   :  { %v66_v5 = vsub.f32 %v852_v31, %v48_v55  ;;  %v65_v6 = vsub.f32 %v847_v30, %v48_v55 }
  0x31   :  { %v64_v59 = vsub.f32 %v62_v57, %v63_v58 }
  0x32   :  { %480 = vperm.xlu1 %667, %v466_v26   ;;  %v671_v26 = vld [vmem:[%s926_s3 + $0x18] sm:$0xff]  }
  0x33   :  { %475 = vperm.xlu0 %666, %v465_v27   ;;  %v69_v60 = vadd.f32 1e-05, %v64_v59  ;;  %v672_v27 = vld [vmem:[%s928_s5] sm:$0xff]  }
  0x34   :  { %642 = vmatprep.mubr.msk.bf16.mxu1 %vm375_vm1, %v672_v27 }
  0x35   :  { %678 = vrsqrt.f32 %v69_v60 }
  0x36   :  { %490 = vperm.xlu1 %667, %v468_v28  }
  0x37   :  { %485 = vperm.xlu0 %666, %v467_v29  }
  0x42   :  { %v679_v62 = vpop.eup %678 }
  0x43   :  { %v73_v0 = vmul.f32 %v679_v62, %v67_v61  ;;  %v74_v3 = vmul.f32 %v679_v62, %v68_v63  ;;  %v72_v12 = vmul.f32 %v679_v62, %v66_v5  ;;  %v71_v13 = vmul.f32 %v679_v62, %v65_v6  ;;  %v674_v5 = vld [vmem:[%s928_s5 + $0x10] sm:$0xff]   ;;  %v675_v6 = vld [vmem:[%s928_s5 + $0x18] sm:$0xff]  }
  0x7d   :  { %v120_v1 = vpop.permute.xlu1 %119 }
  0x7e   :  { %v92_v2 = vpop.permute.xlu0 %91 }
  0x7f   :  { %v101_v4 = vmul.f32 %v92_v2, %v73_v0 }
  0x81   :  { %v125_v7 = vpop.permute.xlu1 %124  ;;  %v129_v10 = vadd.f32 %v120_v1, %v101_v4  ;;  %v673_v4 = vld [vmem:[%s928_s5 + $0x8] sm:$0xff]  }
  0x82   :  { %v97_v8 = vpop.permute.xlu0 %96 }
  0x83   :  { %v102_v9 = vmul.f32 %v97_v8, %v74_v3 }
  0x85   :  { %v130_v11 = vadd.f32 %v125_v7, %v102_v9  ;;  %v87_v14 = vpop.permute.xlu1 %86  ;;  %v676_v7 = vld [vmem:[%s930_s7] sm:$0xff]  }
  0x86   :  { %v82_v15 = vpop.permute.xlu0 %81  ;;  %v100_v17 = vmul.f32 %v87_v14, %v72_v12 }
  0x87   :  { %v148_v16 = vpack.c.bf16 %v130_v11, %v129_v10  ;;  %v99_v18 = vmul.f32 %v82_v15, %v71_v13 }
  0x89   :  { %622 = vmatprep.subr.bf16.mxu0 %v148_v16  ;;  %v115_v19 = vpop.permute.xlu1 %114 }
  0x8a   :  { %v110_v20 = vpop.permute.xlu0 %109  ;;  %623 = vmatpush3.bf16.msra.mxu0 %v148_v16  ;;  %v128_v21 = vadd.f32 %v115_v19, %v100_v17 }
  0x8b   :  { %v127_v22 = vadd.f32 %v110_v20, %v99_v18 }
  0x8d   :  { %v147_v23 = vpack.c.bf16 %v128_v21, %v127_v22  ;;  %v187_v28 = vpop.permute.xlu1 %186 }
  0x8e   :  { %v182_v32 = vpop.permute.xlu0 %181 }
  0x8f   :  { %624 = vmatprep.subr.bf16.mxu0 %v147_v23 }
  0x90   :  { %625 = vmatpush3.bf16.msra.mxu0 %v147_v23 }
  0x91   :  { %v177_v36 = vpop.permute.xlu1 %176 }
  0x92   :  { %v172_v38 = vpop.permute.xlu0 %171 }
  0x93   :  { %627 = vmatmul.mubr.msk.bf16.vlgmr.msra.gmra.mxu0 %vm209_vm0, %v669_v24 }
  0x94   :  { %630 = vmatprep.mubr.msk.bf16.mxu0 %vm209_vm0, %v670_v25 }
  0x95   :  { %v167_v43 = vpop.permute.xlu1 %166 }
  0x96   :  { %v162_v47 = vpop.permute.xlu0 %161 }
  0x99   :  { %v157_v57 = vpop.permute.xlu1 %156 }
  0x9a   :  { %v152_v61 = vpop.permute.xlu0 %151 }
  0x9b   :  { %631 = vmatmul.mubr.msk.bf16.gmra.mxu0 %vm209_vm0, %v671_v26 }
  0x9c   :  { %658 = vmatprep.mubr.msk.bf16.mxu0 %vm375_vm1, %v676_v7 }
  0x9d   :  { %v353_v8 = vpop.permute.xlu1 %352 }
  0x9e   :  { %v348_v10 = vpop.permute.xlu0 %347 }
  0xa1   :  { %v343_v13 = vpop.permute.xlu1 %342 }
  0xa2   :  { %v338_v15 = vpop.permute.xlu0 %337 }
  0xa5   :  { %v333_v19 = vpop.permute.xlu1 %332 }
  0xa6   :  { %v328_v23 = vpop.permute.xlu0 %327 }
 0x153   :  { %v628_v29 = vpop.f32.mrf.mxu0 }
 0x154   :  { %v265_v53 = vadd.f32 %v628_v29, %v162_v47 }
 0x155   :  { %v256_v33 = vpop.f32.mrf.mxu0 }
 0x156   :  { %v289_v62 = vmax.f32 %v265_v53, 0.0  ;;  %v257_v63 = vadd.f32 %v256_v33, %v152_v61 }
 0x157   :  { %v629_v34 = vpop.f32.mrf.mxu0 }
 0x158   :  { %v268_v49 = vadd.f32 %v629_v34, %v167_v43  ;;  %v287_v2 = vmax.f32 %v257_v63, 0.0 }
 0x159   :  { %v259_v37 = vpop.f32.mrf.mxu0 }
 0x15a   :  { %v290_v58 = vmax.f32 %v268_v49, 0.0  ;;  %v260_v59 = vadd.f32 %v259_v37, %v157_v57 }
 0x15b   :  { %v632_v40 = vpop.f32.mrf.mxu0 }
 0x15c   :  { %v281_v42 = vadd.f32 %v632_v40, %v182_v32  ;;  %v312_v0 = vpack.c.bf16 %v290_v58, %v289_v62  ;;  %v288_v1 = vmax.f32 %v260_v59, 0.0 }
 0x15d   :  { %v272_v41 = vpop.f32.mrf.mxu0 }
 0x15e   :  { %v273_v45 = vadd.f32 %v272_v41, %v172_v38  ;;  %v293_v50 = vmax.f32 %v281_v42, 0.0  ;;  %v311_v3 = vpack.c.bf16 %v288_v1, %v287_v2  ;;  %v318_v41 = vpop.permute.xlu0 %317 }
 0x15f   :  { %v633_v44 = vpop.f32.mrf.mxu0 }
 0x160   :  { %v284_v46 = vadd.f32 %v633_v44, %v187_v28  ;;  %v291_v54 = vmax.f32 %v273_v45, 0.0 }
 0x161   :  { %v275_v48 = vpop.f32.mrf.mxu0 }
 0x162   :  { %v294_v51 = vmax.f32 %v284_v46, 0.0  ;;  %v276_v52 = vadd.f32 %v275_v48, %v177_v36  ;;  %v323_v36 = vpop.permute.xlu1 %322  ;;  %v677_v48 = vld [vmem:[%s930_s7 + $0x8] sm:$0xff]   ;;  %v476_v49 = vpop.permute.xlu0 %475  ;;  %s571_s7 = sshll.u32 %s703_s17, 4  ;;  %s572_s7 = int_to_ptr.vmem [resolvable:$true] %s571_s7 }
 0x163   :  { %s680_s18 = scalar_lea.vmem %s572_s7, 512  ;;  %p685_p1 = scmp.lt.s32.totalorder %s572_s7, %s572_s7 }
 0x164   :  { %v292_v55 = vmax.f32 %v276_v52, 0.0  ;;  %v314_v56 = vpack.c.bf16 %v294_v51, %v293_v50  ;;  %p681_p0 = scmp.ne.s32.totalorder %s572_s7, %s680_s18  ;;  %p686_p2 = scmp.lt.s32.totalorder %s680_s18, %s680_s18 }
 0x166   :  { %v313_v60 = vpack.c.bf16 %v292_v55, %v291_v54  ;;  %634 = vmatprep.subr.bf16.mxu1 %v314_v56  ;;  %v481_v50 = vpop.permute.xlu1 %480  ;;  %v486_v51 = vpop.permute.xlu0 %485  ;;  %p687_p3 = por %p686_p2, %p685_p1 }
 0x167   :  { %635 = vmatpush3.bf16.msra.mxu1 %v314_v56 }
 0x168   :  { %636 = vmatprep.subr.bf16.mxu1 %v313_v60  ;;  %p688_p4 = pnand %p687_p3, %p681_p0 }
 0x16a   :  { %v491_v57 = vpop.permute.xlu1 %490 }
 0x16b   :  { %637 = vmatpush3.bf16.msra.mxu1 %v313_v60 }
 0x16c   :  { %638 = vmatprep.subr.bf16.mxu1 %v312_v0 }
 0x16f   :  { %639 = vmatpush3.bf16.msra.mxu1 %v312_v0 }
 0x170   :  { %640 = vmatprep.subr.bf16.mxu1 %v311_v3 }
 0x173   :  { %641 = vmatpush3.bf16.msra.mxu1 %v311_v3 }
 0x176   :  { %643 = vmatmul.mubr.msk.bf16.vlgmr.msra.gmra.mxu1 %vm375_vm1, %v673_v4 }
 0x177   :  { %646 = vmatprep.mubr.msk.bf16.mxu1 %vm375_vm1, %v674_v5 }
 0x17e   :  { %647 = vmatmul.mubr.msk.bf16.gmra.mxu1 %vm375_vm1, %v675_v6 }
 0x236   :  { %v644_v9 = vpop.f32.mrf.mxu1 }
 0x237   :  { %v431_v29 = vadd.f32 %v644_v9, %v328_v23 }
 0x238   :  { %v422_v11 = vpop.f32.mrf.mxu1 }
 0x239   :  { %v455_v42 = vmax.f32 %v431_v29, 0.0  ;;  %v423_v43 = vadd.f32 %v422_v11, %v318_v41 }
 0x23a   :  { %v645_v12 = vpop.f32.mrf.mxu1 }
 0x23b   :  { %v434_v25 = vadd.f32 %v645_v12, %v333_v19  ;;  %v453_v46 = vmax.f32 %v423_v43, 0.0 }
 0x23c   :  { %v425_v14 = vpop.f32.mrf.mxu1 }
 0x23d   :  { %v456_v37 = vmax.f32 %v434_v25, 0.0  ;;  %v426_v38 = vadd.f32 %v425_v14, %v323_v36 }
 0x23e   :  { %v648_v16 = vpop.f32.mrf.mxu1 }
 0x23f   :  { %v447_v18 = vadd.f32 %v648_v16, %v348_v10  ;;  %v470_v44 = vpack.c.bf16 %v456_v37, %v455_v42  ;;  %v454_v45 = vmax.f32 %v426_v38, 0.0 }
 0x240   :  { %v438_v17 = vpop.f32.mrf.mxu1 }
 0x241   :  { %v439_v21 = vadd.f32 %v438_v17, %v338_v15  ;;  %v459_v26 = vmax.f32 %v447_v18, 0.0  ;;  %v469_v47 = vpack.c.bf16 %v454_v45, %v453_v46 }
 0x242   :  { %v649_v20 = vpop.f32.mrf.mxu1 }
 0x243   :  { %v450_v22 = vadd.f32 %v649_v20, %v353_v8  ;;  %v457_v32 = vmax.f32 %v439_v21, 0.0 }
 0x244   :  { %v441_v24 = vpop.f32.mrf.mxu1 }
 0x245   :  { %v460_v27 = vmax.f32 %v450_v22, 0.0  ;;  %v442_v28 = vadd.f32 %v441_v24, %v343_v13 }
 0x247   :  { %v472_v33 = vpack.c.bf16 %v460_v27, %v459_v26  ;;  %v458_v34 = vmax.f32 %v442_v28, 0.0 }
 0x249   :  { %v471_v40 = vpack.c.bf16 %v458_v34, %v457_v32  ;;  %650 = vmatprep.subr.bf16.mxu0 %v472_v33 }
 0x24a   :  { %651 = vmatpush3.bf16.msra.mxu0 %v472_v33 }
 0x24b   :  { %652 = vmatprep.subr.bf16.mxu0 %v471_v40 }
 0x24e   :  { %653 = vmatpush3.bf16.msra.mxu0 %v471_v40 }
 0x24f   :  { %654 = vmatprep.subr.bf16.mxu0 %v470_v44 }
 0x252   :  { %655 = vmatpush3.bf16.msra.mxu0 %v470_v44 }
 0x253   :  { %656 = vmatprep.subr.bf16.mxu0 %v469_v47 }
 0x256   :  { %657 = vmatpush3.bf16.msra.mxu0 %v469_v47 }
 0x259   :  { %659 = vmatmul.mubr.msk.bf16.vlgmr.msra.gmra.mxu0 %vm375_vm1, %v677_v48 }
 0x319   :  { %v660_v52 = vpop.f32.mrf.mxu0 }
 0x31a   :  { %v552_v53 = vadd.f32 %v660_v52, %v486_v51 }
 0x31b   :  { %v543_v54 = vpop.f32.mrf.mxu0 }
 0x31c   :  { %v560_v55 = vadd.f32 %v552_v53, %v863_v35  ;;  %v544_v56 = vadd.f32 %v543_v54, %v476_v49 }
 0x31d   :  { %v661_v58 = vpop.f32.mrf.mxu0 }
 0x31e   :  { %564 = vst [vmem:[#allocation2 + $0x10] sm:$0xff] %v560_v55  ;;  %v558_v59 = vadd.f32 %v544_v56, %v847_v30  ;;  %v555_v60 = vadd.f32 %v661_v58, %v491_v57 }
 0x31f   :  { %v546_v61 = vpop.f32.mrf.mxu0 }
 0x320   :  { %562 = vst [vmem:[#allocation2] sm:$0xff] %v558_v59  ;;  %v561_v62 = vadd.f32 %v555_v60, %v871_v39  ;;  %v547_v63 = vadd.f32 %v546_v61, %v481_v50 }
 0x322   :  { %565 = vst [vmem:[#allocation2 + $0x18] sm:$0xff] %v561_v62  ;;  %v559_v0 = vadd.f32 %v547_v63, %v852_v31 }
 0x324   :  { %563 = vst [vmem:[#allocation2 + $0x8] sm:$0xff] %v559_v0 }
 0x325   :  { %691 = shalt.err (!%p688_p4)
}
 0x326   :  { %s704_s19 = smov 128   ;;  %s705_s6 = smov 8  }
 0x327   :  { %577 = dma.vmem_to_hbm [thread:$0]  %s572_s7, 512, %s932_s9, [#allocation3], %s704_s19, %s704_s19, %s705_s6  }
 0x328   :  { %700 = dma.done.wait [#allocation3], 512  }
 0x329   :  { %701 = vsyncadd [#allocation3], 4294966784 }
 0x32a   :  { %581 = vsyncpa [#allocation3], 1 }

</bundles_post_ra>
